<compile_context>
chip_gen: v7x
topology: tpu7x:2x2x1
jax: 0.10.0
libtpu: 0.0.40
codegen_flags: <defaults>
</compile_context>

<pallas_src>
import jax
import jax.numpy as jnp
from jax.experimental import pallas as pl
from jax.experimental.pallas import tpu as pltpu


def _round_up(x, m):
    return ((x + m - 1) // m) * m


def _cdiv(a, b):
    return -(-a // b)


def upn_kernel(
    # data tiles
    ss_ref,       # (tile_b, 2*state_dim)  = [state | next_state]
    action_ref,   # (tile_b, action_dim)
    # fused weights (built once in the wrapper)
    we1_ref,      # (2*state_dim, 2*hidden)          block-diag(we1, we1)
    we2_ref,      # (2*hidden, 2*latent)             block-diag(we2, we2)
    wdi1_ref,     # (2*latent+action, 2*hidden)      rows: z->[wdy1_z|wi1_z], z_next->[0|wi1_zn], a->[wdy1_a|0]
    wdi2_ref,     # (2*hidden, latent+action)        block-diag(wdy2, wi2)
    wd1_ref,      # (3*latent+action, 2*hidden)      rows: z->[wd1|0], z_next->0, z_pred->[0|wd1], a_pred->0
    wd2_ref,      # (2*hidden, 2*state_dim)          block-diag(wd2, wd2)
    b1_ref,       # (3, 2*hidden)   rows: [be1|be1], [bdy1|bi1], [bd1|bd1]
    b2_ref,       # (1, out_width)  = [be2|be2 | bdy2|bi2 | bd2|bd2]
    # single packed output slab (tile_b, out_width)
    out_ref,
):
    two_latent = we2_ref.shape[1]          # 2 * latent_dim
    latent_action = wdi2_ref.shape[1]      # latent_dim + action_dim

    ss = ss_ref[...]                       # [state | next_state]
    action = action_ref[...]
    b1 = b1_ref[...]
    b2 = b2_ref[...]

    b_e2 = b2[:, :two_latent]
    b_di2 = b2[:, two_latent:two_latent + latent_action]
    b_d2 = b2[:, two_latent + latent_action:]

    # ---- fused encoder (state & next_state in one pass): -> [z | z_next] ----
    h_e = jnp.maximum(
        jnp.dot(ss, we1_ref[...], preferred_element_type=jnp.float32) + b1[0:1, :], 0.0)
    zz = jnp.dot(h_e, we2_ref[...], preferred_element_type=jnp.float32) + b_e2
    # TODO(synk): PyTorch prints a warning on NaN/Inf in z; no side-effecting print in the
    # hot path here (no numeric effect on outputs).

    # ---- fused dynamics + inverse-dynamics: LHS = [z | z_next | action] -> [z_pred | a_pred] ----
    di_in = jnp.concatenate([zz, action], axis=1)
    h_di = jnp.maximum(
        jnp.dot(di_in, wdi1_ref[...], preferred_element_type=jnp.float32) + b1[1:2, :], 0.0)
    di = jnp.dot(h_di, wdi2_ref[...], preferred_element_type=jnp.float32) + b_di2

    # ---- fused decoder x2: LHS = [z | z_next | z_pred | a_pred] -> [s_recon | ns_pred] ----
    d_in = jnp.concatenate([zz, di], axis=1)
    h_d = jnp.maximum(
        jnp.dot(d_in, wd1_ref[...], preferred_element_type=jnp.float32) + b1[2:3, :], 0.0)
    dd = jnp.dot(h_d, wd2_ref[...], preferred_element_type=jnp.float32) + b_d2

    # ---- single full-width packed store: [z | z_next | z_pred | a_pred | s_recon | ns_pred] ----
    out_ref[...] = jnp.concatenate([zz, di, dd], axis=1)


def make_upn_params(key, state_dim, action_dim, latent_dim, hidden=64):
    """PyTorch-Linear-like uniform(-1/sqrt(in), 1/sqrt(in)); weights (in_features, out_features)."""
    def lin(k, fan_in, fan_out):
        kw, kb = jax.random.split(k)
        bound = 1.0 / jnp.sqrt(fan_in)
        w = jax.random.uniform(kw, (fan_in, fan_out), jnp.float32, -bound, bound)
        b = jax.random.uniform(kb, (1, fan_out), jnp.float32, -bound, bound)
        return w, b

    keys = jax.random.split(key, 8)
    p = {}
    p["we1"], p["be1"] = lin(keys[0], state_dim, hidden)
    p["we2"], p["be2"] = lin(keys[1], hidden, latent_dim)
    p["wd1"], p["bd1"] = lin(keys[2], latent_dim, hidden)
    p["wd2"], p["bd2"] = lin(keys[3], hidden, state_dim)
    p["wdy1"], p["bdy1"] = lin(keys[4], latent_dim + action_dim, hidden)
    p["wdy2"], p["bdy2"] = lin(keys[5], hidden, latent_dim)
    p["wi1"], p["bi1"] = lin(keys[6], 2 * latent_dim, hidden)
    p["wi2"], p["bi2"] = lin(keys[7], hidden, action_dim)
    return p


def fuse_upn_params(p, state_dim, action_dim, latent_dim):
    """Build the fused / zero-padded weights once (wrapper-side prep, not hot-path work)."""
    hidden = p["we1"].shape[1]
    z = lambda r, c: jnp.zeros((r, c), jnp.float32)

    wdy1_z, wdy1_a = p["wdy1"][:latent_dim], p["wdy1"][latent_dim:]
    wi1_z, wi1_zn = p["wi1"][:latent_dim], p["wi1"][latent_dim:]

    W_e1 = jnp.block([[p["we1"], z(state_dim, hidden)], [z(state_dim, hidden), p["we1"]]])
    W_e2 = jnp.block([[p["we2"], z(hidden, latent_dim)], [z(hidden, latent_dim), p["we2"]]])

    W_di1 = jnp.concatenate([
        jnp.concatenate([wdy1_z, wi1_z], axis=1),                 # z rows
        jnp.concatenate([z(latent_dim, hidden), wi1_zn], axis=1),  # z_next rows
        jnp.concatenate([wdy1_a, z(action_dim, hidden)], axis=1),  # action rows
    ], axis=0)
    W_di2 = jnp.block([[p["wdy2"], z(hidden, action_dim)], [z(hidden, latent_dim), p["wi2"]]])

    W_d1 = jnp.concatenate([
        jnp.concatenate([p["wd1"], z(latent_dim, hidden)], axis=1),  # z rows      -> decoder #1
        z(latent_dim, 2 * hidden),                                   # z_next rows -> unused
        jnp.concatenate([z(latent_dim, hidden), p["wd1"]], axis=1),  # z_pred rows -> decoder #2
        z(action_dim, 2 * hidden),                                   # a_pred rows -> unused
    ], axis=0)
    W_d2 = jnp.block([[p["wd2"], z(hidden, state_dim)], [z(hidden, state_dim), p["wd2"]]])

    B1 = jnp.concatenate([
        jnp.concatenate([p["be1"], p["be1"]], axis=1),
        jnp.concatenate([p["bdy1"], p["bi1"]], axis=1),
        jnp.concatenate([p["bd1"], p["bd1"]], axis=1),
    ], axis=0)                                                       # (3, 2*hidden)
    B2 = jnp.concatenate(
        [p["be2"], p["be2"], p["bdy2"], p["bi2"], p["bd2"], p["bd2"]], axis=1)  # (1, out_width)

    return (W_e1, W_e2, W_di1, W_di2, W_d1, W_d2, B1, B2)


def upn_forward(state, action, next_state, params, *, tile_b_max=4096):
    batch, state_dim = state.shape
    action_dim = action.shape[-1]
    latent_dim = params["we2"].shape[-1]
    out_width = 3 * latent_dim + action_dim + 2 * state_dim

    weights = fuse_upn_params(params, state_dim, action_dim, latent_dim)

    # ---- batch tile selection ----
    # * multiple of 8 (sublane), capped at tile_b_max (sized for the 32 MiB scoped-VMEM
    #   default with double-buffered f32 tiles, safe on v7x's 64 MiB physical VMEM)
    # * at least 2 grid steps when the batch allows it, so v7x's two TensorCores both get
    #   work under dimension_semantics=("parallel",)
    # * tile derived from cdiv(batch, steps), so padding waste is < one tile
    rows8 = _round_up(batch, 8)
    steps = max(2, _cdiv(rows8, tile_b_max))
    tile_b = max(8, min(_round_up(_cdiv(rows8, steps), 8), rows8))
    padded = _round_up(rows8, tile_b)

    # Encoder input stacking done in the wrapper (free layout plumbing, one fewer operand).
    ss = jnp.concatenate([state, next_state], axis=1)        # (batch, 2*state_dim)
    if padded != batch:
        pad = padded - batch
        ss = jnp.pad(ss, ((0, pad), (0, 0)))
        action = jnp.pad(action, ((0, pad), (0, 0)))

    def data_spec(dim):
        return pl.BlockSpec((tile_b, dim), lambda i: (i, 0))

    def const_spec(arr):
        # Full-array block, same block every grid step -> stays resident in VMEM.
        return pl.BlockSpec(arr.shape, lambda i: (0, 0))

    in_specs = [data_spec(2 * state_dim), data_spec(action_dim)]
    in_specs += [const_spec(w) for w in weights]

    out = pl.pallas_call(
        upn_kernel,
        out_shape=jax.ShapeDtypeStruct((padded, out_width), jnp.float32),
        grid=(padded // tile_b,),
        in_specs=in_specs,
        out_specs=pl.BlockSpec((tile_b, out_width), lambda i: (i, 0)),
        compiler_params=pltpu.CompilerParams(
            dimension_semantics=("parallel",),       # shard batch tiles across TCs on v7x
            vmem_limit_bytes=32 * 1024 * 1024,       # safe on all generations incl. v7x
        ),
    )(ss, action, *weights)

    out = out[:batch]
    o = 0
    z = out[:, o:o + latent_dim];             o += latent_dim
    z_next = out[:, o:o + latent_dim];        o += latent_dim
    z_pred = out[:, o:o + latent_dim];        o += latent_dim
    action_pred = out[:, o:o + action_dim];   o += action_dim
    state_recon = out[:, o:o + state_dim];    o += state_dim
    next_state_pred = out[:, o:o + state_dim]
    return z, z_next, z_pred, action_pred, state_recon, next_state_pred


def upn_reference(state, action, next_state, params):
    """Pure-JAX reference for correctness check (unfused, mirrors the PyTorch module)."""
    def mlp(x, w1, b1, w2, b2):
        return jnp.maximum(x @ w1 + b1, 0.0) @ w2 + b2

    z = mlp(state, params["we1"], params["be1"], params["we2"], params["be2"])
    z_next = mlp(next_state, params["we1"], params["be1"], params["we2"], params["be2"])
    z_pred = mlp(jnp.concatenate([z, action], axis=-1),
                 params["wdy1"], params["bdy1"], params["wdy2"], params["bdy2"])
    action_pred = mlp(jnp.concatenate([z, z_next], axis=-1),
                      params["wi1"], params["bi1"], params["wi2"], params["bi2"])
    state_recon = mlp(z, params["wd1"], params["bd1"], params["wd2"], params["bd2"])
    next_state_pred = mlp(z_pred, params["wd1"], params["bd1"], params["wd2"], params["bd2"])
    return z, z_next, z_pred, action_pred, state_recon, next_state_pred


if __name__ == "__main__":
    state_dim, action_dim, latent_dim = 16, 8, 8

    key = jax.random.PRNGKey(0)
    k_p, k_small, k_multi = jax.random.split(key, 3)
    params = make_upn_params(k_p, state_dim, action_dim, latent_dim)

    def run_check(batch, k):
        k_s, k_a, k_ns = jax.random.split(k, 3)
        state = jax.random.normal(k_s, (batch, state_dim), jnp.float32)
        action = jax.random.normal(k_a, (batch, action_dim), jnp.float32)
        next_state = jax.random.normal(k_ns, (batch, state_dim), jnp.float32)

        outs = jax.block_until_ready(upn_forward(state, action, next_state, params))
        refs = upn_reference(state, action, next_state, params)
        for o, r in zip(outs, refs):
            assert o.shape == r.shape and o.dtype == r.dtype
            err = float(jnp.max(jnp.abs(o - r)))
            assert err < 1e-4, err

    run_check(8, k_small)     # single-tile path
    run_check(200, k_multi)   # multi-step grid + batch-padding path (2 tiles of 104 rows)

    print("KERNEL_OK")
</pallas_src>

<mosaic_0001>
module attributes {stable_mosaic.version = 11 : i64} {
  func.func @upn_kernel(%arg0: i32, %arg1: memref<8x32xf32, #tpu.memory_space<vmem>>, %arg2: memref<8x8xf32, #tpu.memory_space<vmem>>, %arg3: memref<32x128xf32, #tpu.memory_space<vmem>>, %arg4: memref<128x16xf32, #tpu.memory_space<vmem>>, %arg5: memref<24x128xf32, #tpu.memory_space<vmem>>, %arg6: memref<128x16xf32, #tpu.memory_space<vmem>>, %arg7: memref<32x128xf32, #tpu.memory_space<vmem>>, %arg8: memref<128x32xf32, #tpu.memory_space<vmem>>, %arg9: memref<3x128xf32, #tpu.memory_space<vmem>>, %arg10: memref<1x64xf32, #tpu.memory_space<vmem>>, %arg11: memref<8x64xf32, #tpu.memory_space<vmem>>) attributes {dimension_semantics = [#tpu.dimension_semantics<parallel>], iteration_bounds = array<i64: 1>, scalar_prefetch = 0 : i64, scratch_operands = 0 : i64, tpu.core_type = #tpu.core_type<tc>, window_params = [{transform_indices = @transform_0, window_bounds = array<i64: 8, 32>}, {transform_indices = @transform_1, window_bounds = array<i64: 8, 8>}, {pipeline_mode = #tpu.pipeline_mode<synchronous>, transform_indices = @transform_2, window_bounds = array<i64: 32, 128>}, {pipeline_mode = #tpu.pipeline_mode<synchronous>, transform_indices = @transform_3, window_bounds = array<i64: 128, 16>}, {pipeline_mode = #tpu.pipeline_mode<synchronous>, transform_indices = @transform_4, window_bounds = array<i64: 24, 128>}, {pipeline_mode = #tpu.pipeline_mode<synchronous>, transform_indices = @transform_5, window_bounds = array<i64: 128, 16>}, {pipeline_mode = #tpu.pipeline_mode<synchronous>, transform_indices = @transform_6, window_bounds = array<i64: 32, 128>}, {pipeline_mode = #tpu.pipeline_mode<synchronous>, transform_indices = @transform_7, window_bounds = array<i64: 128, 32>}, {pipeline_mode = #tpu.pipeline_mode<synchronous>, transform_indices = @transform_8, window_bounds = array<i64: 3, 128>}, {pipeline_mode = #tpu.pipeline_mode<synchronous>, transform_indices = @transform_9, window_bounds = array<i64: 1, 64>}, {transform_indices = @transform_10, window_bounds = array<i64: 8, 64>}]} {
    %c0 = arith.constant 0 : index
    %c0_0 = arith.constant 0 : index
    %0 = vector.load %arg1[%c0, %c0_0] : memref<8x32xf32, #tpu.memory_space<vmem>>, vector<8x32xf32>
    %c0_1 = arith.constant 0 : index
    %c0_2 = arith.constant 0 : index
    %1 = vector.load %arg2[%c0_1, %c0_2] : memref<8x8xf32, #tpu.memory_space<vmem>>, vector<8x8xf32>
    %c0_3 = arith.constant 0 : index
    %c0_4 = arith.constant 0 : index
    %2 = vector.load %arg9[%c0_3, %c0_4] : memref<3x128xf32, #tpu.memory_space<vmem>>, vector<3x128xf32>
    %c0_5 = arith.constant 0 : index
    %c0_6 = arith.constant 0 : index
    %3 = vector.load %arg10[%c0_5, %c0_6] : memref<1x64xf32, #tpu.memory_space<vmem>>, vector<1x64xf32>
    %4 = vector.extract_strided_slice %3 {offsets = [0, 0], sizes = [1, 16], strides = [1, 1]} : vector<1x64xf32> to vector<1x16xf32>
    %5 = vector.extract_strided_slice %3 {offsets = [0, 16], sizes = [1, 16], strides = [1, 1]} : vector<1x64xf32> to vector<1x16xf32>
    %6 = vector.extract_strided_slice %3 {offsets = [0, 32], sizes = [1, 32], strides = [1, 1]} : vector<1x64xf32> to vector<1x32xf32>
    %c0_7 = arith.constant 0 : index
    %c0_8 = arith.constant 0 : index
    %7 = vector.load %arg3[%c0_7, %c0_8] : memref<32x128xf32, #tpu.memory_space<vmem>>, vector<32x128xf32>
    %cst = arith.constant dense<0.000000e+00> : vector<8x128xf32>
    %8 = tpu.matmul %0, %7, %cst {dimension_numbers = #tpu.dot_dimension_numbers<[1], [0], [0], [1], [0, 0, 1, 1], [], []>} : vector<8x32xf32>, vector<32x128xf32>, vector<8x128xf32> -> vector<8x128xf32>
    %9 = vector.extract_strided_slice %2 {offsets = [0, 0], sizes = [1, 128], strides = [1, 1]} : vector<3x128xf32> to vector<1x128xf32>
    %10 = vector.broadcast %9 : vector<1x128xf32> to vector<8x128xf32>
    %11 = arith.addf %8, %10 : vector<8x128xf32>
    %cst_9 = arith.constant 0.000000e+00 : f32
    %12 = vector.broadcast %cst_9 : f32 to vector<8x128xf32>
    %13 = arith.maximumf %11, %12 : vector<8x128xf32>
    %c0_10 = arith.constant 0 : index
    %c0_11 = arith.constant 0 : index
    %14 = vector.load %arg4[%c0_10, %c0_11] : memref<128x16xf32, #tpu.memory_space<vmem>>, vector<128x16xf32>
    %cst_12 = arith.constant dense<0.000000e+00> : vector<8x16xf32>
    %15 = tpu.matmul %13, %14, %cst_12 {dimension_numbers = #tpu.dot_dimension_numbers<[1], [0], [0], [1], [0, 0, 1, 1], [], []>} : vector<8x128xf32>, vector<128x16xf32>, vector<8x16xf32> -> vector<8x16xf32>
    %16 = vector.broadcast %4 : vector<1x16xf32> to vector<8x16xf32>
    %17 = arith.addf %15, %16 : vector<8x16xf32>
    %18 = tpu.concatenate %17, %1 in 1 : vector<8x16xf32>, vector<8x8xf32> -> vector<8x24xf32>
    %c0_13 = arith.constant 0 : index
    %c0_14 = arith.constant 0 : index
    %19 = vector.load %arg5[%c0_13, %c0_14] : memref<24x128xf32, #tpu.memory_space<vmem>>, vector<24x128xf32>
    %cst_15 = arith.constant dense<0.000000e+00> : vector<8x128xf32>
    %20 = tpu.matmul %18, %19, %cst_15 {dimension_numbers = #tpu.dot_dimension_numbers<[1], [0], [0], [1], [0, 0, 1, 1], [], []>} : vector<8x24xf32>, vector<24x128xf32>, vector<8x128xf32> -> vector<8x128xf32>
    %21 = vector.extract_strided_slice %2 {offsets = [1, 0], sizes = [1, 128], strides = [1, 1]} : vector<3x128xf32> to vector<1x128xf32>
    %22 = vector.broadcast %21 : vector<1x128xf32> to vector<8x128xf32>
    %23 = arith.addf %20, %22 : vector<8x128xf32>
    %cst_16 = arith.constant 0.000000e+00 : f32
    %24 = vector.broadcast %cst_16 : f32 to vector<8x128xf32>
    %25 = arith.maximumf %23, %24 : vector<8x128xf32>
    %c0_17 = arith.constant 0 : index
    %c0_18 = arith.constant 0 : index
    %26 = vector.load %arg6[%c0_17, %c0_18] : memref<128x16xf32, #tpu.memory_space<vmem>>, vector<128x16xf32>
    %cst_19 = arith.constant dense<0.000000e+00> : vector<8x16xf32>
    %27 = tpu.matmul %25, %26, %cst_19 {dimension_numbers = #tpu.dot_dimension_numbers<[1], [0], [0], [1], [0, 0, 1, 1], [], []>} : vector<8x128xf32>, vector<128x16xf32>, vector<8x16xf32> -> vector<8x16xf32>
    %28 = vector.broadcast %5 : vector<1x16xf32> to vector<8x16xf32>
    %29 = arith.addf %27, %28 : vector<8x16xf32>
    %30 = tpu.concatenate %17, %29 in 1 : vector<8x16xf32>, vector<8x16xf32> -> vector<8x32xf32>
    %c0_20 = arith.constant 0 : index
    %c0_21 = arith.constant 0 : index
    %31 = vector.load %arg7[%c0_20, %c0_21] : memref<32x128xf32, #tpu.memory_space<vmem>>, vector<32x128xf32>
    %cst_22 = arith.constant dense<0.000000e+00> : vector<8x128xf32>
    %32 = tpu.matmul %30, %31, %cst_22 {dimension_numbers = #tpu.dot_dimension_numbers<[1], [0], [0], [1], [0, 0, 1, 1], [], []>} : vector<8x32xf32>, vector<32x128xf32>, vector<8x128xf32> -> vector<8x128xf32>
    %33 = vector.extract_strided_slice %2 {offsets = [2, 0], sizes = [1, 128], strides = [1, 1]} : vector<3x128xf32> to vector<1x128xf32>
    %34 = vector.broadcast %33 : vector<1x128xf32> to vector<8x128xf32>
    %35 = arith.addf %32, %34 : vector<8x128xf32>
    %cst_23 = arith.constant 0.000000e+00 : f32
    %36 = vector.broadcast %cst_23 : f32 to vector<8x128xf32>
    %37 = arith.maximumf %35, %36 : vector<8x128xf32>
    %c0_24 = arith.constant 0 : index
    %c0_25 = arith.constant 0 : index
    %38 = vector.load %arg8[%c0_24, %c0_25] : memref<128x32xf32, #tpu.memory_space<vmem>>, vector<128x32xf32>
    %cst_26 = arith.constant dense<0.000000e+00> : vector<8x32xf32>
    %39 = tpu.matmul %37, %38, %cst_26 {dimension_numbers = #tpu.dot_dimension_numbers<[1], [0], [0], [1], [0, 0, 1, 1], [], []>} : vector<8x128xf32>, vector<128x32xf32>, vector<8x32xf32> -> vector<8x32xf32>
    %40 = vector.broadcast %6 : vector<1x32xf32> to vector<8x32xf32>
    %41 = arith.addf %39, %40 : vector<8x32xf32>
    %42 = tpu.concatenate %17, %29, %41 in 1 : vector<8x16xf32>, vector<8x16xf32>, vector<8x32xf32> -> vector<8x64xf32>
    %c0_27 = arith.constant 0 : index
    %c0_28 = arith.constant 0 : index
    %43 = vector.load %arg11[%c0_27, %c0_28] : memref<8x64xf32, #tpu.memory_space<vmem>>, vector<8x64xf32>
    tpu.vector_store %arg11[%c0_27, %c0_28], %42 {strides = array<i32>} : memref<8x64xf32, #tpu.memory_space<vmem>>, vector<8x64xf32>,
    return
  }
  func.func @transform_0(%arg0: i32) -> (i32, i32) {
    %c0_i32 = arith.constant 0 : i32
    %c0_i32_0 = arith.constant 0 : i32
    return %arg0, %c0_i32 : i32, i32
  }
  func.func @transform_1(%arg0: i32) -> (i32, i32) {
    %c0_i32 = arith.constant 0 : i32
    %c0_i32_0 = arith.constant 0 : i32
    return %arg0, %c0_i32 : i32, i32
  }
  func.func @transform_2(%arg0: i32) -> (i32, i32) {
    %c0_i32 = arith.constant 0 : i32
    %c0_i32_0 = arith.constant 0 : i32
    %c0_i32_1 = arith.constant 0 : i32
    return %c0_i32, %c0_i32_0 : i32, i32
  }
  func.func @transform_3(%arg0: i32) -> (i32, i32) {
    %c0_i32 = arith.constant 0 : i32
    %c0_i32_0 = arith.constant 0 : i32
    %c0_i32_1 = arith.constant 0 : i32
    return %c0_i32, %c0_i32_0 : i32, i32
  }
  func.func @transform_4(%arg0: i32) -> (i32, i32) {
    %c0_i32 = arith.constant 0 : i32
    %c0_i32_0 = arith.constant 0 : i32
    %c0_i32_1 = arith.constant 0 : i32
    return %c0_i32, %c0_i32_0 : i32, i32
  }
  func.func @transform_5(%arg0: i32) -> (i32, i32) {
    %c0_i32 = arith.constant 0 : i32
    %c0_i32_0 = arith.constant 0 : i32
    %c0_i32_1 = arith.constant 0 : i32
    return %c0_i32, %c0_i32_0 : i32, i32
  }
  func.func @transform_6(%arg0: i32) -> (i32, i32) {
    %c0_i32 = arith.constant 0 : i32
    %c0_i32_0 = arith.constant 0 : i32
    %c0_i32_1 = arith.constant 0 : i32
    return %c0_i32, %c0_i32_0 : i32, i32
  }
  func.func @transform_7(%arg0: i32) -> (i32, i32) {
    %c0_i32 = arith.constant 0 : i32
    %c0_i32_0 = arith.constant 0 : i32
    %c0_i32_1 = arith.constant 0 : i32
    return %c0_i32, %c0_i32_0 : i32, i32
  }
  func.func @transform_8(%arg0: i32) -> (i32, i32) {
    %c0_i32 = arith.constant 0 : i32
    %c0_i32_0 = arith.constant 0 : i32
    %c0_i32_1 = arith.constant 0 : i32
    return %c0_i32, %c0_i32_0 : i32, i32
  }
  func.func @transform_9(%arg0: i32) -> (i32, i32) {
    %c0_i32 = arith.constant 0 : i32
    %c0_i32_0 = arith.constant 0 : i32
    %c0_i32_1 = arith.constant 0 : i32
    return %c0_i32, %c0_i32_0 : i32, i32
  }
  func.func @transform_10(%arg0: i32) -> (i32, i32) {
    %c0_i32 = arith.constant 0 : i32
    %c0_i32_0 = arith.constant 0 : i32
    return %arg0, %c0_i32 : i32, i32
  }
}

</mosaic_0001>

<bundles_post_ra>
// kernel: tpu_custom_call.1
= control target key start
LH: loop header
LB: loop body
LE: loop exit
PB: predicated region body
PF: predicated region fallthrough
CT: control target
= control target key end

     0   :  { %v913_v3 = vmov 0.0|0.0   ;;  %vm914_vm0 = vmmov 0   ;;  %v915_v6 = vmov 0.0   ;;  %s1245_s0 = inlined_call_operand.vmem [shape: f32[8,32], index: 0, kind: input, shape index: {}]   ;;  %s1246_s1 = inlined_call_operand.vmem [shape: f32[8,8], index: 1, kind: input, shape index: {}]   ;;  %s1247_s2 = inlined_call_operand.vmem [shape: f32[32,128], index: 2, kind: input, shape index: {}]   ;;  %s1248_s3 = inlined_call_operand.vmem [shape: f32[128,16], index: 3, kind: input, shape index: {}]   ;;  %s1249_s4 = inlined_call_operand.vmem [shape: f32[24,128], index: 4, kind: input, shape index: {}]   ;;  %s1250_s5 = inlined_call_operand.vmem [shape: f32[128,16], index: 5, kind: input, shape index: {}]   ;;  %s1251_s6 = inlined_call_operand.vmem [shape: f32[32,128], index: 6, kind: input, shape index: {}]   ;;  %s1252_s7 = inlined_call_operand.vmem [shape: f32[128,32], index: 7, kind: input, shape index: {}]   ;;  %s1253_s8 = inlined_call_operand.vmem [shape: f32[3,128], index: 8, kind: input, shape index: {}]   ;;  %s1254_s9 = inlined_call_operand.vmem [shape: f32[1,64], index: 9, kind: input, shape index: {}]   ;;  %s1255_s10 = inlined_call_operand.hbm [shape: f32[8,64], index: 10, kind: output, shape index: {}]  }
   0x1   :  { %v40_v0 = vld [vmem:[%s1247_s2] sm:$0xff]  ;;  %v41_v1 = vld [vmem:[%s1247_s2 + $0x8] sm:$0xff]  ;;  %v42_v2 = vld [vmem:[%s1247_s2 + $0x10] sm:$0xff]  ;;  %794 = vmatprep.subr.bf16.mxu0 %v913_v3  ;;  %666 = vmatprep.mubr.msk.f32.mxu0 %vm914_vm0, %v915_v6 }
   0x2   :  { %v795_v4 = vpack.c.bf16 %v41_v1, %v40_v0  ;;  %v43_v5 = vld [vmem:[%s1247_s2 + $0x18] sm:$0xff]  ;;  %v123_v7 = vld [vmem:[%s1248_s3] sm:$0xff]  ;;  %800 = vmatprep.subr.bf16.mxu1 %v913_v3  ;;  %v124_v8 = vld [vmem:[%s1248_s3 + $0x8] sm:$0xff]  ;;  %701 = vmatprep.mubr.msk.f32.mxu1 %vm914_vm0, %v915_v6 }
   0x3   :  { %v125_v9 = vld [vmem:[%s1248_s3 + $0x10] sm:$0xff]  ;;  %v126_v10 = vld [vmem:[%s1248_s3 + $0x18] sm:$0xff]  ;;  %v798_v11 = vpack.c.bf16 %v43_v5, %v42_v2  ;;  %v801_v12 = vpack.c.bf16 %v124_v8, %v123_v7  ;;  %v127_v14 = vld [vmem:[%s1248_s3 + $0x20] sm:$0xff] }
   0x4   :  { %796 = vmatpush3.bf16.msra.mxu0 %v795_v4  ;;  %v804_v13 = vpack.c.bf16 %v126_v10, %v125_v9  ;;  %v128_v15 = vld [vmem:[%s1248_s3 + $0x28] sm:$0xff] }
   0x5   :  { %797 = vmatprep.subr.bf16.mxu0 %v913_v3  ;;  %802 = vmatpush3.bf16.msra.mxu1 %v801_v12 }
   0x6   :  { %803 = vmatprep.subr.bf16.mxu1 %v913_v3 }
   0x7   :  { %15 = vsyncpa [#allocation3], 0  ;;  %v36_v16 = vld [vmem:[%s1245_s0] sm:$0xff]  ;;  %vm48_vm1 = vcmask 261120   ;;  %v807_v17 = vpack.c.bf16 %v128_v15, %v127_v14  ;;  %v129_v18 = vld [vmem:[%s1248_s3 + $0x30] sm:$0xff]  ;;  %s916_s0 = smov 16   ;;  %v44_v37 = vlaneseq }
   0x8   :  { %799 = vmatpush3.bf16.msra.mxu0 %v798_v11  ;;  %v130_v19 = vld [vmem:[%s1248_s3 + $0x38] sm:$0xff]  ;;  %v131_v21 = vld [vmem:[%s1248_s3 + $0x40] sm:$0xff]  ;;  %v132_v22 = vld [vmem:[%s1248_s3 + $0x48] sm:$0xff]  ;;  %vm219_vm2 = vcmask 130048   ;;  %vm228_vm3 = vcmask 195584   ;;  %s917_s25 = smov 112  }
   0x9   :  { %824 = vmatprep.subr.bf16.mxu0 %v913_v3  ;;  %805 = vmatpush3.bf16.msra.mxu1 %v804_v13  ;;  %v810_v20 = vpack.c.bf16 %v130_v19, %v129_v18  ;;  %v813_v23 = vpack.c.bf16 %v132_v22, %v131_v21  ;;  %v133_v24 = vld [vmem:[%s1248_s3 + $0x50] sm:$0xff]  ;;  %v134_v25 = vld [vmem:[%s1248_s3 + $0x58] sm:$0xff]  ;;  %v135_v27 = vld [vmem:[%s1248_s3 + $0x60] sm:$0xff]  ;;  %v1069_v38 = vshrl.u32 %v44_v37, 7  ;;  %s918_s15 = smov 96   ;;  %s919_s16 = smov 32  }
   0xa   :  { %806 = vmatprep.subr.bf16.mxu1 %v913_v3  ;;  %v816_v26 = vpack.c.bf16 %v134_v25, %v133_v24  ;;  %v136_v28 = vld [vmem:[%s1248_s3 + $0x68] sm:$0xff]  ;;  %v137_v30 = vld [vmem:[%s1248_s3 + $0x70] sm:$0xff]  ;;  %v138_v31 = vld [vmem:[%s1248_s3 + $0x78] sm:$0xff]  ;;  %vm573_vm4 = vcmask 523264  }
   0xb   :  { %667 = vmatmul.mubr.msk.f32.vlgmr.msra.gmra.mrb[0].mxu0 %vm48_vm1, %v36_v16  ;;  %v819_v29 = vpack.c.bf16 %v136_v28, %v135_v27  ;;  %v822_v32 = vpack.c.bf16 %v138_v31, %v137_v30  ;;  %v37_v33 = vld [vmem:[%s1246_s1] sm:$0xff]  ;;  %v222_v35 = vld [vmem:[%s1249_s4 + $0x8] sm:$0xff]  ;;  %v46_v39 = vsub.s32 0, %v1069_v38  ;;  %v223_v46 = vld [vmem:[%s1249_s4 + $0x10] sm:$0xff]  ;;  %v226_v15 = vsub.s32 1, %v1069_v38 }
   0xc   :  { %710 = vmatprep.mubr.msk.f32.mxu0 %vm914_vm0, %v915_v6  ;;  %v221_v34 = vld [vmem:[%s1249_s4] sm:$0xff]  ;;  %216 = vrot.lane.b32.xlu0 %v37_v33, %s916_s0  ;;  %v304_v49 = vld [vmem:[%s1250_s5 + $0x8] sm:$0xff]  ;;  %v305_v55 = vld [vmem:[%s1250_s5 + $0x10] sm:$0xff] }
   0xd   :  { %808 = vmatpush3.bf16.msra.mxu1 %v807_v17  ;;  %v825_v36 = vpack.c.bf16 %v222_v35, %v221_v34  ;;  %v1075_v40 = vld [vmem:[%s1253_s8] sm:$0x7]  ;;  %v306_v56 = vld [vmem:[%s1250_s5 + $0x18] sm:$0xff]  ;;  %v308_v60 = vld [vmem:[%s1250_s5 + $0x28] sm:$0xff] }
   0xe   :  { %809 = vmatprep.subr.bf16.mxu1 %v913_v3  ;;  %v47_v41 = vrot.slane %v1075_v40, %v46_v39  ;;  %v1087_v47 = vld [vmem:[%s1254_s9] ss:$0 sm:$0xff]  ;;  %v831_v58 = vpack.c.bf16 %v306_v56, %v305_v55  ;;  %v309_v62 = vld [vmem:[%s1250_s5 + $0x30] sm:$0xff]  ;;  %v310_v63 = vld [vmem:[%s1250_s5 + $0x38] sm:$0xff]  ;;  %v227_v16 = vrot.slane %v1075_v40, %v226_v15 }
   0xf   :  { %826 = vmatpush3.bf16.msra.mxu0 %v825_v36  ;;  %v303_v48 = vld [vmem:[%s1250_s5] sm:$0xff]  ;;  %v837_v0 = vpack.c.bf16 %v310_v63, %v309_v62  ;;  %v312_v2 = vld [vmem:[%s1250_s5 + $0x48] sm:$0xff]  ;;  %v313_v5 = vld [vmem:[%s1250_s5 + $0x50] sm:$0xff] }
  0x10   :  { %708 = vmatprep.subr.mxu0 %v915_v6  ;;  %v828_v54 = vpack.c.bf16 %v304_v49, %v303_v48  ;;  %v307_v59 = vld [vmem:[%s1250_s5 + $0x20] sm:$0xff]  ;;  %v314_v7 = vld [vmem:[%s1250_s5 + $0x58] sm:$0xff]  ;;  %v316_v10 = vld [vmem:[%s1250_s5 + $0x68] sm:$0xff]  ;;  %319 = vrot.lane.b32.xlu0 %v1087_v47, %s917_s25 }
  0x11   :  { %811 = vmatpush3.bf16.msra.mxu1 %v810_v20  ;;  %v834_v61 = vpack.c.bf16 %v308_v60, %v307_v59  ;;  %v311_v1 = vld [vmem:[%s1250_s5 + $0x40] sm:$0xff]  ;;  %v843_v8 = vpack.c.bf16 %v314_v7, %v313_v5  ;;  %v317_v12 = vld [vmem:[%s1250_s5 + $0x70] sm:$0xff]  ;;  %v318_v13 = vld [vmem:[%s1250_s5 + $0x78] sm:$0xff] }
  0x12   :  { %812 = vmatprep.subr.bf16.mxu1 %v913_v3  ;;  %v840_v4 = vpack.c.bf16 %v312_v2, %v311_v1  ;;  %v315_v9 = vld [vmem:[%s1250_s5 + $0x60] sm:$0xff]  ;;  %v849_v14 = vpack.c.bf16 %v318_v13, %v317_v12  ;;  %v398_v22 = vld [vmem:[%s1251_s6 + $0x8] sm:$0xff]  ;;  %v400_v25 = vld [vmem:[%s1251_s6 + $0x18] sm:$0xff] }
  0x13   :  { %709 = vmatpush3.msra.mxu0 %v223_v46  ;;  %v846_v11 = vpack.c.bf16 %v316_v10, %v315_v9  ;;  %v397_v21 = vld [vmem:[%s1251_s6] sm:$0xff]  ;;  %v480_v27 = vld [vmem:[%s1252_s7 + $0x8] sm:$0xff]  ;;  %v481_v28 = vld [vmem:[%s1252_s7 + $0x10] sm:$0xff] }
  0x14   :  { %827 = vmatprep.subr.bf16.mxu0 %v913_v3  ;;  %v852_v24 = vpack.c.bf16 %v398_v22, %v397_v21  ;;  %v482_v30 = vld [vmem:[%s1252_s7 + $0x18] sm:$0xff]  ;;  %v484_v33 = vld [vmem:[%s1252_s7 + $0x28] sm:$0xff]  ;;  %v485_v36 = vld [vmem:[%s1252_s7 + $0x30] sm:$0xff] }
  0x15   :  { %814 = vmatpush3.bf16.msra.mxu1 %v813_v23  ;;  %v399_v23 = vld [vmem:[%s1251_s6 + $0x10] sm:$0xff]  ;;  %v861_v31 = vpack.c.bf16 %v482_v30, %v481_v28  ;;  %v486_v37 = vld [vmem:[%s1252_s7 + $0x38] sm:$0xff] }
  0x16   :  { %815 = vmatprep.subr.bf16.mxu1 %v913_v3  ;;  %v489_v48 = vld [vmem:[%s1252_s7 + $0x50] sm:$0xff]  ;;  %v490_v49 = vld [vmem:[%s1252_s7 + $0x58] sm:$0xff] }
  0x19   :  { %817 = vmatpush3.bf16.msra.mxu1 %v816_v26  ;;  %v855_v26 = vpack.c.bf16 %v400_v25, %v399_v23 }
  0x1a   :  { %818 = vmatprep.subr.bf16.mxu1 %v913_v3 }
  0x1d   :  { %820 = vmatpush3.bf16.msra.mxu1 %v819_v29 }
  0x1e   :  { %821 = vmatprep.subr.bf16.mxu1 %v913_v3 }
  0x21   :  { %823 = vmatpush3.bf16.msra.mxu1 %v822_v32  ;;  %v483_v32 = vld [vmem:[%s1252_s7 + $0x20] sm:$0xff] }
  0x22   :  { %857 = vmatprep.subr.bf16.mxu1 %v913_v3  ;;  %v864_v35 = vpack.c.bf16 %v484_v33, %v483_v32 }
  0x7e   :  { %v217_v51 = vpop.permute.xlu0 %216 }
  0x82   :  { %v320_v34 = vpop.permute.xlu0 %319 }
  0xde   :  { %v118_v42 = vpop.f32.mrb[0].mxu0 }
  0xdf   :  { %v119_v43 = vadd.f32 %v118_v42, %v47_v41  ;;  %v668_v44 = vpop.f32.mrb[1].mxu0 }
  0xe0   :  { %v487_v44 = vld [vmem:[%s1252_s7 + $0x40] sm:$0xff] }
  0xe1   :  { %v122_v45 = vmax.f32 %v119_v43, 0.0  ;;  %v867_v43 = vpack.c.bf16 %v486_v37, %v485_v36 }
  0xe3   :  { %702 = vmatmul.mubr.f32.vlgmr.msra.gmra.mrb[0].mxu1 %v122_v45  ;;  %v488_v45 = vld [vmem:[%s1252_s7 + $0x48] sm:$0xff] }
  0xe4   :  { %791 = vmatprep.mubr.msk.f32.mxu1 %vm914_vm0, %v915_v6  ;;  %v870_v46 = vpack.c.bf16 %v488_v45, %v487_v44 }
 0x1b6   :  { %v211_v50 = vpop.f32.mrb[0].mxu1 }
 0x1b7   :  { %v1096_v52 = vadd.f32 %v1087_v47, %v211_v50  ;;  %v703_v53 = vpop.f32.mrb[1].mxu1  ;;  %v873_v50 = vpack.c.bf16 %v490_v49, %v489_v48 }
 0x1b8   :  { %v492_v53 = vld [vmem:[%s1252_s7 + $0x68] sm:$0xff] }
 0x1b9   :  { %v220_v57 = vsel %vm219_vm2, %v1096_v52, %v217_v51  ;;  %v491_v51 = vld [vmem:[%s1252_s7 + $0x60] sm:$0xff] }
 0x1ba   :  { %711 = vmatmul.mubr.msk.f32.vlgmr.msra.gmra.mrb[2].mxu0 %vm228_vm3, %v220_v57  ;;  %v493_v57 = vld [vmem:[%s1252_s7 + $0x70] sm:$0xff] }
 0x1bb   :  { %829 = vmatpush3.bf16.msra.mxu0 %v828_v54  ;;  %745 = vmatprep.mubr.msk.f32.mxu0 %vm914_vm0, %v915_v6  ;;  %v876_v54 = vpack.c.bf16 %v492_v53, %v491_v51 }
 0x1bc   :  { %830 = vmatprep.subr.bf16.mxu0 %v913_v3 }
 0x1bf   :  { %832 = vmatpush3.bf16.msra.mxu0 %v831_v58  ;;  %v494_v58 = vld [vmem:[%s1252_s7 + $0x78] sm:$0xff] }
 0x1c0   :  { %833 = vmatprep.subr.bf16.mxu0 %v913_v3  ;;  %v879_v59 = vpack.c.bf16 %v494_v58, %v493_v57 }
 0x1c3   :  { %835 = vmatpush3.bf16.msra.mxu0 %v834_v61 }
 0x1c4   :  { %836 = vmatprep.subr.bf16.mxu0 %v913_v3 }
 0x1c7   :  { %838 = vmatpush3.bf16.msra.mxu0 %v837_v0 }
 0x1c8   :  { %839 = vmatprep.subr.bf16.mxu0 %v913_v3 }
 0x1cb   :  { %841 = vmatpush3.bf16.msra.mxu0 %v840_v4 }
 0x1cc   :  { %842 = vmatprep.subr.bf16.mxu0 %v913_v3 }
 0x1cf   :  { %844 = vmatpush3.bf16.msra.mxu0 %v843_v8 }
 0x1d0   :  { %845 = vmatprep.subr.bf16.mxu0 %v913_v3 }
 0x1d3   :  { %847 = vmatpush3.bf16.msra.mxu0 %v846_v11 }
 0x1d4   :  { %848 = vmatprep.subr.bf16.mxu0 %v913_v3 }
 0x1d7   :  { %850 = vmatpush3.bf16.msra.mxu0 %v849_v14 }
 0x1d8   :  { %851 = vmatprep.subr.bf16.mxu0 %v913_v3 }
 0x28d   :  { %v298_v17 = vpop.f32.mrb[2].mxu0 }
 0x28e   :  { %v299_v18 = vadd.f32 %v298_v17, %v227_v16  ;;  %v712_v19 = vpop.f32.mrb[3].mxu0 }
 0x290   :  { %v302_v20 = vmax.f32 %v299_v18, 0.0 }
 0x292   :  { %746 = vmatmul.mubr.f32.vlgmr.msra.gmra.mrb[4].mxu0 %v302_v20 }
 0x293   :  { %756 = vmatprep.mubr.msk.f32.mxu0 %vm914_vm0, %v915_v6  ;;  %853 = vmatpush3.bf16.msra.mxu0 %v852_v24  ;;  %v479_v6 = vld [vmem:[%s1252_s7] sm:$0xff]  ;;  %s920_s7 = smov [#allocation2]  }
 0x294   :  { %854 = vmatprep.subr.bf16.mxu0 %v913_v3  ;;  %v858_v29 = vpack.c.bf16 %v480_v27, %v479_v6  ;;  %s581_s17 = sshll.u32 %s920_s7, 4  ;;  %s582_s17 = int_to_ptr.vmem [resolvable:$true] %s581_s17 }
 0x295   :  { %s889_s1 = scalar_lea.vmem %s582_s17, 128  ;;  %p894_p1 = scmp.lt.s32.totalorder %s582_s17, %s582_s17 }
 0x296   :  { %859 = vmatpush3.bf16.msra.mxu1 %v858_v29  ;;  %p890_p0 = scmp.ne.s32.totalorder %s582_s17, %s889_s1  ;;  %p895_p2 = scmp.lt.s32.totalorder %s889_s1, %s889_s1 }
 0x297   :  { %856 = vmatpush3.bf16.msra.mxu0 %v855_v26  ;;  %860 = vmatprep.subr.bf16.mxu1 %v913_v3 }
 0x298   :  { %p896_p3 = por %p895_p2, %p894_p1 }
 0x29a   :  { %862 = vmatpush3.bf16.msra.mxu1 %v861_v31  ;;  %p897_p4 = pnand %p896_p3, %p890_p0 }
 0x29b   :  { %863 = vmatprep.subr.bf16.mxu1 %v913_v3 }
 0x29e   :  { %865 = vmatpush3.bf16.msra.mxu1 %v864_v35 }
 0x29f   :  { %866 = vmatprep.subr.bf16.mxu1 %v913_v3 }
 0x2a2   :  { %868 = vmatpush3.bf16.msra.mxu1 %v867_v43 }
 0x2a3   :  { %869 = vmatprep.subr.bf16.mxu1 %v913_v3 }
 0x2a6   :  { %871 = vmatpush3.bf16.msra.mxu1 %v870_v46 }
 0x2a7   :  { %872 = vmatprep.subr.bf16.mxu1 %v913_v3 }
 0x2aa   :  { %874 = vmatpush3.bf16.msra.mxu1 %v873_v50 }
 0x2ab   :  { %875 = vmatprep.subr.bf16.mxu1 %v913_v3 }
 0x2ae   :  { %877 = vmatpush3.bf16.msra.mxu1 %v876_v54 }
 0x2af   :  { %878 = vmatprep.subr.bf16.mxu1 %v913_v3  ;;  %v403_v3 = vsub.s32 2, %v1069_v38 }
 0x2b1   :  { %v404_v60 = vrot.slane %v1075_v40, %v403_v3 }
 0x2b2   :  { %880 = vmatpush3.bf16.msra.mxu1 %v879_v59 }
 0x365   :  { %v388_v39 = vpop.f32.mrb[4].mxu0 }
 0x366   :  { %v389_v41 = vadd.f32 %v388_v39, %v320_v34  ;;  %v747_v42 = vpop.f32.mrb[5].mxu0 }
 0x368   :  { %393 = vrot.lane.b32.xlu1 %v389_v41, %s916_s0 }
 0x36c   :  { %495 = vrot.lane.b32.xlu1 %v1087_v47, %s918_s15 }
 0x3da   :  { %v394_v55 = vpop.permute.xlu1 %393 }
 0x3db   :  { %v396_v56 = vsel %vm219_vm2, %v1096_v52, %v394_v55 }
 0x3dc   :  { %757 = vmatmul.mubr.msk.f32.vlgmr.msra.gmra.mrb[6].mxu0 %vm48_vm1, %v396_v56 }
 0x3de   :  { %v496_v0 = vpop.permute.xlu1 %495 }
 0x4af   :  { %v474_v52 = vpop.f32.mrb[6].mxu0 }
 0x4b0   :  { %v475_v61 = vadd.f32 %v474_v52, %v404_v60  ;;  %v758_v62 = vpop.f32.mrb[7].mxu0 }
 0x4b2   :  { %v478_v63 = vmax.f32 %v475_v61, 0.0 }
 0x4b4   :  { %792 = vmatmul.mubr.f32.vlgmr.msra.gmra.mrb[2].mxu1 %v478_v63 }
 0x587   :  { %v564_v1 = vpop.f32.mrb[2].mxu1 }
 0x588   :  { %v565_v2 = vadd.f32 %v564_v1, %v496_v0  ;;  %v793_v4 = vpop.f32.mrb[3].mxu1 }
 0x58a   :  { %569 = vrot.lane.b32.xlu0 %v565_v2, %s919_s16 }
 0x5fc   :  { %v570_v5 = vpop.permute.xlu0 %569 }
 0x5fd   :  { %v572_v38 = vsel %vm48_vm1, %v396_v56, %v570_v5 }
 0x5fe   :  { %574 = vst.msk [vmem:[#allocation2] sm:$0xff] %vm573_vm4, %v572_v38 }
 0x5ff   :  { %900 = shalt.err (!%p897_p4)
}
 0x600   :  { %s901_s18 = scalar_lea.hbm %s1255_s10, 128 }
 0x601   :  { %p902_p5 = scmp.ne.s32.totalorder %s1255_s10, %s901_s18  ;;  %p905_p6 = scmp.lt.u32.totalorder %s901_s18, %s1255_s10 }
 0x603   :  { %p907_p7 = pnand %p905_p6, %p902_p5 }
 0x605   :  { %910 = shalt.err (!%p907_p7)
}
 0x606   :  { %584 = dma.vmem_to_hbm [thread:$0]  %s582_s17, 128, %s1255_s10, [#allocation3]  }
 0x607   :  { %911 = dma.done.wait [#allocation3], 128  }
 0x608   :  { %912 = vsyncadd [#allocation3], 4294967168 }
 0x609   :  { %588 = vsyncpa [#allocation3], 1 }

</bundles_post_ra>
